<compile_context>
chip_gen: v6e
topology: v6e:2x2x1
jax: 0.10.0
libtpu: 0.0.40
codegen_flags: <defaults>
</compile_context>

<pallas_src>
import jax
import jax.numpy as jnp
import numpy as np
from jax.experimental import pallas as pl
from jax.experimental.pallas import tpu as pltpu

INPUT_SIZE = 6
HIDDEN_SIZE = 3
TARGET_SIZE = 1

# Row offsets inside the packed parameter blob (sublane-aligned: multiples of 8).
_WIH_ROW = 0          # rows [0, I)        : W_ih   (I, 4H)
_WHH_ROW = 8          # rows [8, 8+H)      : W_hh   (H, 4H)
_BIAS_ROW = 16        # row  [16, 17)      : bias   (1, 4H)  (= b_ih + b_hh)
_BLOB_ROWS = 24


def lstm_tagger_kernel(x_ref, hc0_ref, w_ref, wo_ref, out_ref, h_scratch):
    """Whole-sequence LSTM + output projection, fully resident in VMEM.

    x_ref    : (T*B, I)            f32   (time-major, flattened over (T, B))
    hc0_ref  : (2, B, H)           f32   [h0 ; c0]
    w_ref    : (_BLOB_ROWS, 4H)    f32   packed W_ih / W_hh / bias, gate order i,f,o,g
    wo_ref   : (H+1, O)            f32   [W_out ; b_out]
    out_ref  : (T*B, O)            f32
    h_scratch: (T*B, H)            f32   VMEM scratch holding every h_t
    """
    TB, I = x_ref.shape
    B = hc0_ref.shape[1]
    H = hc0_ref.shape[2]
    T = TB // B

    w = w_ref[...]
    w_ih = w[_WIH_ROW:_WIH_ROW + I, :]          # (I, 4H)
    w_hh = w[_WHH_ROW:_WHH_ROW + H, :]          # (H, 4H)
    bias = w[_BIAS_ROW:_BIAS_ROW + 1, :]        # (1, 4H)

    # Hoisted input projection for the whole sequence: one MXU matmul outside
    # the recurrence instead of 4*T tiny dots inside it.
    xproj = jnp.dot(x_ref[...], w_ih, preferred_element_type=jnp.float32) + bias  # (T*B, 4H)

    # Hoist the broadcast rows of W_hh out of the unrolled time loop (JAX does
    # not CSE slices, so leaving these inside the loop traces T*H slice ops).
    w_hh_rows = [w_hh[k:k + 1, :] for k in range(H)]   # each (1, 4H)

    h = hc0_ref[0]                              # (B, H)
    c = hc0_ref[1]                              # (B, H)

    # Fully unrolled serial recurrence (T is static and small).
    for t in range(T):
        # h @ W_hh as a broadcast-multiply-add chain on the VPU (avoids the MXU
        # push/pop round trip on the latency-bound serial chain).
        rec = h[:, 0:1] * w_hh_rows[0]
        for k in range(1, H):
            rec = rec + h[:, k:k + 1] * w_hh_rows[k]

        gates = xproj[t * B:(t + 1) * B, :] + rec        # (B, 4H), order i, f, o, g
        # Full-width sigmoid: one EUP op on a single vreg either way; saves a
        # lane-slice per step versus sigmoid(gates[:, :3H]).
        sig = jax.nn.sigmoid(gates)
        i_g = sig[:, 0:H]
        f_g = sig[:, H:2 * H]
        o_g = sig[:, 2 * H:3 * H]
        g_g = jnp.tanh(gates[:, 3 * H:4 * H])

        c = f_g * c + i_g * g_g
        h = o_g * jnp.tanh(c)
        h_scratch[t * B:(t + 1) * B, :] = h

    # Post-loop hidden2tag: one bulk matmul + bias, single store.
    w_out = wo_ref[0:H, :]                       # (H, O)
    b_out = wo_ref[H:H + 1, :]                   # (1, O)
    out_ref[...] = (jnp.dot(h_scratch[...], w_out, preferred_element_type=jnp.float32)
                    + b_out).astype(out_ref.dtype)


@jax.jit
def lstm_tagger_forward(x, hc0, w_blob, w_out_blob):
    T, B, _ = x.shape
    x_flat = x.reshape(T * B, INPUT_SIZE)
    out_flat = pl.pallas_call(
        lstm_tagger_kernel,
        out_shape=jax.ShapeDtypeStruct((T * B, TARGET_SIZE), jnp.float32),
        in_specs=[pl.BlockSpec(memory_space=pltpu.MemorySpace.VMEM)] * 4,
        out_specs=pl.BlockSpec(memory_space=pltpu.MemorySpace.VMEM),
        scratch_shapes=[pltpu.VMEM((T * B, HIDDEN_SIZE), jnp.float32)],
    )(x_flat, hc0, w_blob, w_out_blob)
    return out_flat.reshape(T, B, TARGET_SIZE)


def _pack_params(w_ih, w_hh, b_ih, b_hh, w_out, b_out):
    """Repack PyTorch LSTM/Linear params into the fused, aligned kernel layout."""
    H, I = HIDDEN_SIZE, INPUT_SIZE
    order = jnp.array([0, 1, 3, 2])  # PyTorch (i, f, g, o) -> kernel (i, f, o, g)

    def fuse(w):  # (4H, K) -> (K, 4H) with gate-major columns in kernel order
        k = w.shape[1]
        wg = w.reshape(4, H, k)[order]               # (4, H, K), reordered gates
        return wg.transpose(2, 0, 1).reshape(k, 4 * H)

    w_ih_f = fuse(w_ih)                              # (I, 4H)
    w_hh_f = fuse(w_hh)                              # (H, 4H)
    bias = (b_ih + b_hh).reshape(4, H)[order].reshape(1, 4 * H)

    blob = jnp.zeros((_BLOB_ROWS, 4 * H), jnp.float32)
    blob = blob.at[_WIH_ROW:_WIH_ROW + I].set(w_ih_f)
    blob = blob.at[_WHH_ROW:_WHH_ROW + H].set(w_hh_f)
    blob = blob.at[_BIAS_ROW:_BIAS_ROW + 1].set(bias)

    wo = jnp.concatenate([w_out.T, b_out.reshape(1, TARGET_SIZE)], axis=0)  # (H+1, O)
    return blob, wo


def ref_forward(x, h0, c0, w_ih, w_hh, b_ih, b_hh, w_out, b_out):
    """Pure-JAX reference matching torch.nn.LSTM + Linear semantics."""
    H = HIDDEN_SIZE

    def step(carry, x_t):
        h, c = carry
        gates = x_t @ w_ih.T + h @ w_hh.T + b_ih + b_hh
        i = jax.nn.sigmoid(gates[:, 0:H])
        f = jax.nn.sigmoid(gates[:, H:2 * H])
        g = jnp.tanh(gates[:, 2 * H:3 * H])
        o = jax.nn.sigmoid(gates[:, 3 * H:4 * H])
        c_n = f * c + i * g
        h_n = o * jnp.tanh(c_n)
        return (h_n, c_n), h_n

    _, hs = jax.lax.scan(step, (h0, c0), x)
    return hs @ w_out.T + b_out


if __name__ == "__main__":
    T, B = 8, 2  # seq_len=8, batch=2

    key = jax.random.PRNGKey(0)
    keys = jax.random.split(key, 9)
    bound = 1.0 / (HIDDEN_SIZE ** 0.5)  # PyTorch default uniform init bound

    # PyTorch-shaped parameters (deterministic synthetic init).
    w_ih = jax.random.uniform(keys[0], (4 * HIDDEN_SIZE, INPUT_SIZE), jnp.float32, -bound, bound)
    w_hh = jax.random.uniform(keys[1], (4 * HIDDEN_SIZE, HIDDEN_SIZE), jnp.float32, -bound, bound)
    b_ih = jax.random.uniform(keys[2], (4 * HIDDEN_SIZE,), jnp.float32, -bound, bound)
    b_hh = jax.random.uniform(keys[3], (4 * HIDDEN_SIZE,), jnp.float32, -bound, bound)
    w_out = jax.random.uniform(keys[4], (TARGET_SIZE, HIDDEN_SIZE), jnp.float32, -bound, bound)
    b_out = jax.random.uniform(keys[5], (TARGET_SIZE,), jnp.float32, -bound, bound)

    # Inputs: input (T, B, I); hidden = (h0, c0), each (1, B, H).
    x = jax.random.normal(keys[6], (T, B, INPUT_SIZE), jnp.float32)
    h0 = jax.random.normal(keys[7], (1, B, HIDDEN_SIZE), jnp.float32)
    c0 = jax.random.normal(keys[8], (1, B, HIDDEN_SIZE), jnp.float32)

    # Collapse 8 kernel args into 4: x, stacked (h0, c0), packed weights, packed head.
    w_blob, w_out_blob = _pack_params(w_ih, w_hh, b_ih, b_hh, w_out, b_out)
    hc0 = jnp.stack([h0[0], c0[0]], axis=0)  # (2, B, H)

    tag_space = lstm_tagger_forward(x, hc0, w_blob, w_out_blob)
    jax.block_until_ready(tag_space)

    expected = ref_forward(x, h0[0], c0[0], w_ih, w_hh, b_ih, b_hh, w_out, b_out)
    np.testing.assert_allclose(np.asarray(tag_space), np.asarray(expected),
                               rtol=1e-5, atol=1e-5)

    print("KERNEL_OK")
</pallas_src>

<mosaic_0001>
module attributes {stable_mosaic.version = 11 : i64} {
  func.func @lstm_tagger_kernel(%arg0: memref<16x6xf32, #tpu.memory_space<vmem>>, %arg1: memref<2x2x3xf32, #tpu.memory_space<vmem>>, %arg2: memref<24x12xf32, #tpu.memory_space<vmem>>, %arg3: memref<4x1xf32, #tpu.memory_space<vmem>>, %arg4: memref<16x1xf32, #tpu.memory_space<vmem>>, %arg5: memref<16x3xf32, #tpu.memory_space<vmem>>) attributes {dimension_semantics = [], scalar_prefetch = 0 : i64, scratch_operands = 1 : i64, tpu.core_type = #tpu.core_type<tc>} {
    %c0 = arith.constant 0 : index
    %c0_0 = arith.constant 0 : index
    %0 = vector.load %arg2[%c0, %c0_0] : memref<24x12xf32, #tpu.memory_space<vmem>>, vector<24x12xf32>
    %1 = vector.extract_strided_slice %0 {offsets = [0, 0], sizes = [6, 12], strides = [1, 1]} : vector<24x12xf32> to vector<6x12xf32>
    %2 = vector.extract_strided_slice %0 {offsets = [8, 0], sizes = [3, 12], strides = [1, 1]} : vector<24x12xf32> to vector<3x12xf32>
    %3 = vector.extract_strided_slice %0 {offsets = [16, 0], sizes = [1, 12], strides = [1, 1]} : vector<24x12xf32> to vector<1x12xf32>
    %c0_1 = arith.constant 0 : index
    %c0_2 = arith.constant 0 : index
    %4 = vector.load %arg0[%c0_1, %c0_2] : memref<16x6xf32, #tpu.memory_space<vmem>>, vector<16x6xf32>
    %cst = arith.constant dense<0.000000e+00> : vector<16x12xf32>
    %5 = tpu.matmul %4, %1, %cst {dimension_numbers = #tpu.dot_dimension_numbers<[1], [0], [0], [1], [0, 0, 1, 1], [], []>} : vector<16x6xf32>, vector<6x12xf32>, vector<16x12xf32> -> vector<16x12xf32>
    %6 = vector.broadcast %3 : vector<1x12xf32> to vector<16x12xf32>
    %7 = arith.addf %5, %6 : vector<16x12xf32>
    %8 = vector.extract_strided_slice %2 {offsets = [0, 0], sizes = [1, 12], strides = [1, 1]} : vector<3x12xf32> to vector<1x12xf32>
    %9 = vector.extract_strided_slice %2 {offsets = [1, 0], sizes = [1, 12], strides = [1, 1]} : vector<3x12xf32> to vector<1x12xf32>
    %10 = vector.extract_strided_slice %2 {offsets = [2, 0], sizes = [1, 12], strides = [1, 1]} : vector<3x12xf32> to vector<1x12xf32>
    %c0_3 = arith.constant 0 : index
    %c0_4 = arith.constant 0 : index
    %c0_5 = arith.constant 0 : index
    %11 = vector.load %arg1[%c0_3, %c0_4, %c0_5] : memref<2x2x3xf32, #tpu.memory_space<vmem>>, vector<1x2x3xf32>
    %12 = vector.shape_cast %11 : vector<1x2x3xf32> to vector<2x3xf32>
    %c1 = arith.constant 1 : index
    %c0_6 = arith.constant 0 : index
    %c0_7 = arith.constant 0 : index
    %13 = vector.load %arg1[%c1, %c0_6, %c0_7] : memref<2x2x3xf32, #tpu.memory_space<vmem>>, vector<1x2x3xf32>
    %14 = vector.shape_cast %13 : vector<1x2x3xf32> to vector<2x3xf32>
    %15 = vector.extract_strided_slice %12 {offsets = [0, 0], sizes = [2, 1], strides = [1, 1]} : vector<2x3xf32> to vector<2x1xf32>
    %16 = vector.broadcast %15 : vector<2x1xf32> to vector<2x12xf32>
    %17 = vector.broadcast %8 : vector<1x12xf32> to vector<2x12xf32>
    %18 = arith.mulf %16, %17 : vector<2x12xf32>
    %19 = vector.extract_strided_slice %12 {offsets = [0, 1], sizes = [2, 1], strides = [1, 1]} : vector<2x3xf32> to vector<2x1xf32>
    %20 = vector.broadcast %19 : vector<2x1xf32> to vector<2x12xf32>
    %21 = vector.broadcast %9 : vector<1x12xf32> to vector<2x12xf32>
    %22 = arith.mulf %20, %21 : vector<2x12xf32>
    %23 = arith.addf %18, %22 : vector<2x12xf32>
    %24 = vector.extract_strided_slice %12 {offsets = [0, 2], sizes = [2, 1], strides = [1, 1]} : vector<2x3xf32> to vector<2x1xf32>
    %25 = vector.broadcast %24 : vector<2x1xf32> to vector<2x12xf32>
    %26 = vector.broadcast %10 : vector<1x12xf32> to vector<2x12xf32>
    %27 = arith.mulf %25, %26 : vector<2x12xf32>
    %28 = arith.addf %23, %27 : vector<2x12xf32>
    %29 = vector.extract_strided_slice %7 {offsets = [0, 0], sizes = [2, 12], strides = [1, 1]} : vector<16x12xf32> to vector<2x12xf32>
    %30 = arith.addf %29, %28 : vector<2x12xf32>
    %31 = arith.negf %30 : vector<2x12xf32>
    %32 = math.exp %31 : vector<2x12xf32>
    %cst_8 = arith.constant 1.000000e+00 : f32
    %33 = vector.broadcast %cst_8 : f32 to vector<2x12xf32>
    %34 = arith.addf %33, %32 : vector<2x12xf32>
    %35 = arith.divf %33, %34 : vector<2x12xf32>
    %36 = vector.extract_strided_slice %35 {offsets = [0, 0], sizes = [2, 3], strides = [1, 1]} : vector<2x12xf32> to vector<2x3xf32>
    %37 = vector.extract_strided_slice %35 {offsets = [0, 3], sizes = [2, 3], strides = [1, 1]} : vector<2x12xf32> to vector<2x3xf32>
    %38 = vector.extract_strided_slice %35 {offsets = [0, 6], sizes = [2, 3], strides = [1, 1]} : vector<2x12xf32> to vector<2x3xf32>
    %39 = vector.extract_strided_slice %30 {offsets = [0, 9], sizes = [2, 3], strides = [1, 1]} : vector<2x12xf32> to vector<2x3xf32>
    %40 = math.tanh %39 : vector<2x3xf32>
    %41 = arith.mulf %37, %14 : vector<2x3xf32>
    %42 = arith.mulf %36, %40 : vector<2x3xf32>
    %43 = arith.addf %41, %42 : vector<2x3xf32>
    %44 = math.tanh %43 : vector<2x3xf32>
    %45 = arith.mulf %38, %44 : vector<2x3xf32>
    %c0_9 = arith.constant 0 : index
    %c0_10 = arith.constant 0 : index
    %46 = vector.load %arg5[%c0_9, %c0_10] : memref<16x3xf32, #tpu.memory_space<vmem>>, vector<2x3xf32>
    tpu.vector_store %arg5[%c0_9, %c0_10], %45 {strides = array<i32>} : memref<16x3xf32, #tpu.memory_space<vmem>>, vector<2x3xf32>,
    %47 = vector.extract_strided_slice %45 {offsets = [0, 0], sizes = [2, 1], strides = [1, 1]} : vector<2x3xf32> to vector<2x1xf32>
    %48 = vector.broadcast %47 : vector<2x1xf32> to vector<2x12xf32>
    %49 = vector.broadcast %8 : vector<1x12xf32> to vector<2x12xf32>
    %50 = arith.mulf %48, %49 : vector<2x12xf32>
    %51 = vector.extract_strided_slice %45 {offsets = [0, 1], sizes = [2, 1], strides = [1, 1]} : vector<2x3xf32> to vector<2x1xf32>
    %52 = vector.broadcast %51 : vector<2x1xf32> to vector<2x12xf32>
    %53 = vector.broadcast %9 : vector<1x12xf32> to vector<2x12xf32>
    %54 = arith.mulf %52, %53 : vector<2x12xf32>
    %55 = arith.addf %50, %54 : vector<2x12xf32>
    %56 = vector.extract_strided_slice %45 {offsets = [0, 2], sizes = [2, 1], strides = [1, 1]} : vector<2x3xf32> to vector<2x1xf32>
    %57 = vector.broadcast %56 : vector<2x1xf32> to vector<2x12xf32>
    %58 = vector.broadcast %10 : vector<1x12xf32> to vector<2x12xf32>
    %59 = arith.mulf %57, %58 : vector<2x12xf32>
    %60 = arith.addf %55, %59 : vector<2x12xf32>
    %61 = vector.extract_strided_slice %7 {offsets = [2, 0], sizes = [2, 12], strides = [1, 1]} : vector<16x12xf32> to vector<2x12xf32>
    %62 = arith.addf %61, %60 : vector<2x12xf32>
    %63 = arith.negf %62 : vector<2x12xf32>
    %64 = math.exp %63 : vector<2x12xf32>
    %cst_11 = arith.constant 1.000000e+00 : f32
    %65 = vector.broadcast %cst_11 : f32 to vector<2x12xf32>
    %66 = arith.addf %65, %64 : vector<2x12xf32>
    %67 = arith.divf %65, %66 : vector<2x12xf32>
    %68 = vector.extract_strided_slice %67 {offsets = [0, 0], sizes = [2, 3], strides = [1, 1]} : vector<2x12xf32> to vector<2x3xf32>
    %69 = vector.extract_strided_slice %67 {offsets = [0, 3], sizes = [2, 3], strides = [1, 1]} : vector<2x12xf32> to vector<2x3xf32>
    %70 = vector.extract_strided_slice %67 {offsets = [0, 6], sizes = [2, 3], strides = [1, 1]} : vector<2x12xf32> to vector<2x3xf32>
    %71 = vector.extract_strided_slice %62 {offsets = [0, 9], sizes = [2, 3], strides = [1, 1]} : vector<2x12xf32> to vector<2x3xf32>
    %72 = math.tanh %71 : vector<2x3xf32>
    %73 = arith.mulf %69, %43 : vector<2x3xf32>
    %74 = arith.mulf %68, %72 : vector<2x3xf32>
    %75 = arith.addf %73, %74 : vector<2x3xf32>
    %76 = math.tanh %75 : vector<2x3xf32>
    %77 = arith.mulf %70, %76 : vector<2x3xf32>
    %c2 = arith.constant 2 : index
    %c0_12 = arith.constant 0 : index
    %78 = vector.load %arg5[%c2, %c0_12] : memref<16x3xf32, #tpu.memory_space<vmem>>, vector<2x3xf32>
    tpu.vector_store %arg5[%c2, %c0_12], %77 {strides = array<i32>} : memref<16x3xf32, #tpu.memory_space<vmem>>, vector<2x3xf32>,
    %79 = vector.extract_strided_slice %77 {offsets = [0, 0], sizes = [2, 1], strides = [1, 1]} : vector<2x3xf32> to vector<2x1xf32>
    %80 = vector.broadcast %79 : vector<2x1xf32> to vector<2x12xf32>
    %81 = vector.broadcast %8 : vector<1x12xf32> to vector<2x12xf32>
    %82 = arith.mulf %80, %81 : vector<2x12xf32>
    %83 = vector.extract_strided_slice %77 {offsets = [0, 1], sizes = [2, 1], strides = [1, 1]} : vector<2x3xf32> to vector<2x1xf32>
    %84 = vector.broadcast %83 : vector<2x1xf32> to vector<2x12xf32>
    %85 = vector.broadcast %9 : vector<1x12xf32> to vector<2x12xf32>
    %86 = arith.mulf %84, %85 : vector<2x12xf32>
    %87 = arith.addf %82, %86 : vector<2x12xf32>
    %88 = vector.extract_strided_slice %77 {offsets = [0, 2], sizes = [2, 1], strides = [1, 1]} : vector<2x3xf32> to vector<2x1xf32>
    %89 = vector.broadcast %88 : vector<2x1xf32> to vector<2x12xf32>
    %90 = vector.broadcast %10 : vector<1x12xf32> to vector<2x12xf32>
    %91 = arith.mulf %89, %90 : vector<2x12xf32>
    %92 = arith.addf %87, %91 : vector<2x12xf32>
    %93 = vector.extract_strided_slice %7 {offsets = [4, 0], sizes = [2, 12], strides = [1, 1]} : vector<16x12xf32> to vector<2x12xf32>
    %94 = arith.addf %93, %92 : vector<2x12xf32>
    %95 = arith.negf %94 : vector<2x12xf32>
    %96 = math.exp %95 : vector<2x12xf32>
    %cst_13 = arith.constant 1.000000e+00 : f32
    %97 = vector.broadcast %cst_13 : f32 to vector<2x12xf32>
    %98 = arith.addf %97, %96 : vector<2x12xf32>
    %99 = arith.divf %97, %98 : vector<2x12xf32>
    %100 = vector.extract_strided_slice %99 {offsets = [0, 0], sizes = [2, 3], strides = [1, 1]} : vector<2x12xf32> to vector<2x3xf32>
    %101 = vector.extract_strided_slice %99 {offsets = [0, 3], sizes = [2, 3], strides = [1, 1]} : vector<2x12xf32> to vector<2x3xf32>
    %102 = vector.extract_strided_slice %99 {offsets = [0, 6], sizes = [2, 3], strides = [1, 1]} : vector<2x12xf32> to vector<2x3xf32>
    %103 = vector.extract_strided_slice %94 {offsets = [0, 9], sizes = [2, 3], strides = [1, 1]} : vector<2x12xf32> to vector<2x3xf32>
    %104 = math.tanh %103 : vector<2x3xf32>
    %105 = arith.mulf %101, %75 : vector<2x3xf32>
    %106 = arith.mulf %100, %104 : vector<2x3xf32>
    %107 = arith.addf %105, %106 : vector<2x3xf32>
    %108 = math.tanh %107 : vector<2x3xf32>
    %109 = arith.mulf %102, %108 : vector<2x3xf32>
    %c4 = arith.constant 4 : index
    %c0_14 = arith.constant 0 : index
    %110 = vector.load %arg5[%c4, %c0_14] : memref<16x3xf32, #tpu.memory_space<vmem>>, vector<2x3xf32>
    tpu.vector_store %arg5[%c4, %c0_14], %109 {strides = array<i32>} : memref<16x3xf32, #tpu.memory_space<vmem>>, vector<2x3xf32>,
    %111 = vector.extract_strided_slice %109 {offsets = [0, 0], sizes = [2, 1], strides = [1, 1]} : vector<2x3xf32> to vector<2x1xf32>
    %112 = vector.broadcast %111 : vector<2x1xf32> to vector<2x12xf32>
    %113 = vector.broadcast %8 : vector<1x12xf32> to vector<2x12xf32>
    %114 = arith.mulf %112, %113 : vector<2x12xf32>
    %115 = vector.extract_strided_slice %109 {offsets = [0, 1], sizes = [2, 1], strides = [1, 1]} : vector<2x3xf32> to vector<2x1xf32>
    %116 = vector.broadcast %115 : vector<2x1xf32> to vector<2x12xf32>
    %117 = vector.broadcast %9 : vector<1x12xf32> to vector<2x12xf32>
    %118 = arith.mulf %116, %117 : vector<2x12xf32>
    %119 = arith.addf %114, %118 : vector<2x12xf32>
    %120 = vector.extract_strided_slice %109 {offsets = [0, 2], sizes = [2, 1], strides = [1, 1]} : vector<2x3xf32> to vector<2x1xf32>
    %121 = vector.broadcast %120 : vector<2x1xf32> to vector<2x12xf32>
    %122 = vector.broadcast %10 : vector<1x12xf32> to vector<2x12xf32>
    %123 = arith.mulf %121, %122 : vector<2x12xf32>
    %124 = arith.addf %119, %123 : vector<2x12xf32>
    %125 = vector.extract_strided_slice %7 {offsets = [6, 0], sizes = [2, 12], strides = [1, 1]} : vector<16x12xf32> to vector<2x12xf32>
    %126 = arith.addf %125, %124 : vector<2x12xf32>
    %127 = arith.negf %126 : vector<2x12xf32>
    %128 = math.exp %127 : vector<2x12xf32>
    %cst_15 = arith.constant 1.000000e+00 : f32
    %129 = vector.broadcast %cst_15 : f32 to vector<2x12xf32>
    %130 = arith.addf %129, %128 : vector<2x12xf32>
    %131 = arith.divf %129, %130 : vector<2x12xf32>
    %132 = vector.extract_strided_slice %131 {offsets = [0, 0], sizes = [2, 3], strides = [1, 1]} : vector<2x12xf32> to vector<2x3xf32>
    %133 = vector.extract_strided_slice %131 {offsets = [0, 3], sizes = [2, 3], strides = [1, 1]} : vector<2x12xf32> to vector<2x3xf32>
    %134 = vector.extract_strided_slice %131 {offsets = [0, 6], sizes = [2, 3], strides = [1, 1]} : vector<2x12xf32> to vector<2x3xf32>
    %135 = vector.extract_strided_slice %126 {offsets = [0, 9], sizes = [2, 3], strides = [1, 1]} : vector<2x12xf32> to vector<2x3xf32>
    %136 = math.tanh %135 : vector<2x3xf32>
    %137 = arith.mulf %133, %107 : vector<2x3xf32>
    %138 = arith.mulf %132, %136 : vector<2x3xf32>
    %139 = arith.addf %137, %138 : vector<2x3xf32>
    %140 = math.tanh %139 : vector<2x3xf32>
    %141 = arith.mulf %134, %140 : vector<2x3xf32>
    %c6 = arith.constant 6 : index
    %c0_16 = arith.constant 0 : index
    %142 = vector.load %arg5[%c6, %c0_16] : memref<16x3xf32, #tpu.memory_space<vmem>>, vector<2x3xf32>
    tpu.vector_store %arg5[%c6, %c0_16], %141 {strides = array<i32>} : memref<16x3xf32, #tpu.memory_space<vmem>>, vector<2x3xf32>,
    %143 = vector.extract_strided_slice %141 {offsets = [0, 0], sizes = [2, 1], strides = [1, 1]} : vector<2x3xf32> to vector<2x1xf32>
    %144 = vector.broadcast %143 : vector<2x1xf32> to vector<2x12xf32>
    %145 = vector.broadcast %8 : vector<1x12xf32> to vector<2x12xf32>
    %146 = arith.mulf %144, %145 : vector<2x12xf32>
    %147 = vector.extract_strided_slice %141 {offsets = [0, 1], sizes = [2, 1], strides = [1, 1]} : vector<2x3xf32> to vector<2x1xf32>
    %148 = vector.broadcast %147 : vector<2x1xf32> to vector<2x12xf32>
    %149 = vector.broadcast %9 : vector<1x12xf32> to vector<2x12xf32>
    %150 = arith.mulf %148, %149 : vector<2x12xf32>
    %151 = arith.addf %146, %150 : vector<2x12xf32>
    %152 = vector.extract_strided_slice %141 {offsets = [0, 2], sizes = [2, 1], strides = [1, 1]} : vector<2x3xf32> to vector<2x1xf32>
    %153 = vector.broadcast %152 : vector<2x1xf32> to vector<2x12xf32>
    %154 = vector.broadcast %10 : vector<1x12xf32> to vector<2x12xf32>
    %155 = arith.mulf %153, %154 : vector<2x12xf32>
    %156 = arith.addf %151, %155 : vector<2x12xf32>
    %157 = vector.extract_strided_slice %7 {offsets = [8, 0], sizes = [2, 12], strides = [1, 1]} : vector<16x12xf32> to vector<2x12xf32>
    %158 = arith.addf %157, %156 : vector<2x12xf32>
    %159 = arith.negf %158 : vector<2x12xf32>
    %160 = math.exp %159 : vector<2x12xf32>
    %cst_17 = arith.constant 1.000000e+00 : f32
    %161 = vector.broadcast %cst_17 : f32 to vector<2x12xf32>
    %162 = arith.addf %161, %160 : vector<2x12xf32>
    %163 = arith.divf %161, %162 : vector<2x12xf32>
    %164 = vector.extract_strided_slice %163 {offsets = [0, 0], sizes = [2, 3], strides = [1, 1]} : vector<2x12xf32> to vector<2x3xf32>
    %165 = vector.extract_strided_slice %163 {offsets = [0, 3], sizes = [2, 3], strides = [1, 1]} : vector<2x12xf32> to vector<2x3xf32>
    %166 = vector.extract_strided_slice %163 {offsets = [0, 6], sizes = [2, 3], strides = [1, 1]} : vector<2x12xf32> to vector<2x3xf32>
    %167 = vector.extract_strided_slice %158 {offsets = [0, 9], sizes = [2, 3], strides = [1, 1]} : vector<2x12xf32> to vector<2x3xf32>
    %168 = math.tanh %167 : vector<2x3xf32>
    %169 = arith.mulf %165, %139 : vector<2x3xf32>
    %170 = arith.mulf %164, %168 : vector<2x3xf32>
    %171 = arith.addf %169, %170 : vector<2x3xf32>
    %172 = math.tanh %171 : vector<2x3xf32>
    %173 = arith.mulf %166, %172 : vector<2x3xf32>
    %c8 = arith.constant 8 : index
    %c0_18 = arith.constant 0 : index
    %174 = vector.load %arg5[%c8, %c0_18] : memref<16x3xf32, #tpu.memory_space<vmem>>, vector<2x3xf32>
    tpu.vector_store %arg5[%c8, %c0_18], %173 {strides = array<i32>} : memref<16x3xf32, #tpu.memory_space<vmem>>, vector<2x3xf32>,
    %175 = vector.extract_strided_slice %173 {offsets = [0, 0], sizes = [2, 1], strides = [1, 1]} : vector<2x3xf32> to vector<2x1xf32>
    %176 = vector.broadcast %175 : vector<2x1xf32> to vector<2x12xf32>
    %177 = vector.broadcast %8 : vector<1x12xf32> to vector<2x12xf32>
    %178 = arith.mulf %176, %177 : vector<2x12xf32>
    %179 = vector.extract_strided_slice %173 {offsets = [0, 1], sizes = [2, 1], strides = [1, 1]} : vector<2x3xf32> to vector<2x1xf32>
    %180 = vector.broadcast %179 : vector<2x1xf32> to vector<2x12xf32>
    %181 = vector.broadcast %9 : vector<1x12xf32> to vector<2x12xf32>
    %182 = arith.mulf %180, %181 : vector<2x12xf32>
    %183 = arith.addf %178, %182 : vector<2x12xf32>
    %184 = vector.extract_strided_slice %173 {offsets = [0, 2], sizes = [2, 1], strides = [1, 1]} : vector<2x3xf32> to vector<2x1xf32>
    %185 = vector.broadcast %184 : vector<2x1xf32> to vector<2x12xf32>
    %186 = vector.broadcast %10 : vector<1x12xf32> to vector<2x12xf32>
    %187 = arith.mulf %185, %186 : vector<2x12xf32>
    %188 = arith.addf %183, %187 : vector<2x12xf32>
    %189 = vector.extract_strided_slice %7 {offsets = [10, 0], sizes = [2, 12], strides = [1, 1]} : vector<16x12xf32> to vector<2x12xf32>
    %190 = arith.addf %189, %188 : vector<2x12xf32>
    %191 = arith.negf %190 : vector<2x12xf32>
    %192 = math.exp %191 : vector<2x12xf32>
    %cst_19 = arith.constant 1.000000e+00 : f32
    %193 = vector.broadcast %cst_19 : f32 to vector<2x12xf32>
    %194 = arith.addf %193, %192 : vector<2x12xf32>
    %195 = arith.divf %193, %194 : vector<2x12xf32>
    %196 = vector.extract_strided_slice %195 {offsets = [0, 0], sizes = [2, 3], strides = [1, 1]} : vector<2x12xf32> to vector<2x3xf32>
    %197 = vector.extract_strided_slice %195 {offsets = [0, 3], sizes = [2, 3], strides = [1, 1]} : vector<2x12xf32> to vector<2x3xf32>
    %198 = vector.extract_strided_slice %195 {offsets = [0, 6], sizes = [2, 3], strides = [1, 1]} : vector<2x12xf32> to vector<2x3xf32>
    %199 = vector.extract_strided_slice %190 {offsets = [0, 9], sizes = [2, 3], strides = [1, 1]} : vector<2x12xf32> to vector<2x3xf32>
    %200 = math.tanh %199 : vector<2x3xf32>
    %201 = arith.mulf %197, %171 : vector<2x3xf32>
    %202 = arith.mulf %196, %200 : vector<2x3xf32>
    %203 = arith.addf %201, %202 : vector<2x3xf32>
    %204 = math.tanh %203 : vector<2x3xf32>
    %205 = arith.mulf %198, %204 : vector<2x3xf32>
    %c10 = arith.constant 10 : index
    %c0_20 = arith.constant 0 : index
    %206 = vector.load %arg5[%c10, %c0_20] : memref<16x3xf32, #tpu.memory_space<vmem>>, vector<2x3xf32>
    tpu.vector_store %arg5[%c10, %c0_20], %205 {strides = array<i32>} : memref<16x3xf32, #tpu.memory_space<vmem>>, vector<2x3xf32>,
    %207 = vector.extract_strided_slice %205 {offsets = [0, 0], sizes = [2, 1], strides = [1, 1]} : vector<2x3xf32> to vector<2x1xf32>
    %208 = vector.broadcast %207 : vector<2x1xf32> to vector<2x12xf32>
    %209 = vector.broadcast %8 : vector<1x12xf32> to vector<2x12xf32>
    %210 = arith.mulf %208, %209 : vector<2x12xf32>
    %211 = vector.extract_strided_slice %205 {offsets = [0, 1], sizes = [2, 1], strides = [1, 1]} : vector<2x3xf32> to vector<2x1xf32>
    %212 = vector.broadcast %211 : vector<2x1xf32> to vector<2x12xf32>
    %213 = vector.broadcast %9 : vector<1x12xf32> to vector<2x12xf32>
    %214 = arith.mulf %212, %213 : vector<2x12xf32>
    %215 = arith.addf %210, %214 : vector<2x12xf32>
    %216 = vector.extract_strided_slice %205 {offsets = [0, 2], sizes = [2, 1], strides = [1, 1]} : vector<2x3xf32> to vector<2x1xf32>
    %217 = vector.broadcast %216 : vector<2x1xf32> to vector<2x12xf32>
    %218 = vector.broadcast %10 : vector<1x12xf32> to vector<2x12xf32>
    %219 = arith.mulf %217, %218 : vector<2x12xf32>
    %220 = arith.addf %215, %219 : vector<2x12xf32>
    %221 = vector.extract_strided_slice %7 {offsets = [12, 0], sizes = [2, 12], strides = [1, 1]} : vector<16x12xf32> to vector<2x12xf32>
    %222 = arith.addf %221, %220 : vector<2x12xf32>
    %223 = arith.negf %222 : vector<2x12xf32>
    %224 = math.exp %223 : vector<2x12xf32>
    %cst_21 = arith.constant 1.000000e+00 : f32
    %225 = vector.broadcast %cst_21 : f32 to vector<2x12xf32>
    %226 = arith.addf %225, %224 : vector<2x12xf32>
    %227 = arith.divf %225, %226 : vector<2x12xf32>
    %228 = vector.extract_strided_slice %227 {offsets = [0, 0], sizes = [2, 3], strides = [1, 1]} : vector<2x12xf32> to vector<2x3xf32>
    %229 = vector.extract_strided_slice %227 {offsets = [0, 3], sizes = [2, 3], strides = [1, 1]} : vector<2x12xf32> to vector<2x3xf32>
    %230 = vector.extract_strided_slice %227 {offsets = [0, 6], sizes = [2, 3], strides = [1, 1]} : vector<2x12xf32> to vector<2x3xf32>
    %231 = vector.extract_strided_slice %222 {offsets = [0, 9], sizes = [2, 3], strides = [1, 1]} : vector<2x12xf32> to vector<2x3xf32>
    %232 = math.tanh %231 : vector<2x3xf32>
    %233 = arith.mulf %229, %203 : vector<2x3xf32>
    %234 = arith.mulf %228, %232 : vector<2x3xf32>
    %235 = arith.addf %233, %234 : vector<2x3xf32>
    %236 = math.tanh %235 : vector<2x3xf32>
    %237 = arith.mulf %230, %236 : vector<2x3xf32>
    %c12 = arith.constant 12 : index
    %c0_22 = arith.constant 0 : index
    %238 = vector.load %arg5[%c12, %c0_22] : memref<16x3xf32, #tpu.memory_space<vmem>>, vector<2x3xf32>
    tpu.vector_store %arg5[%c12, %c0_22], %237 {strides = array<i32>} : memref<16x3xf32, #tpu.memory_space<vmem>>, vector<2x3xf32>,
    %239 = vector.extract_strided_slice %237 {offsets = [0, 0], sizes = [2, 1], strides = [1, 1]} : vector<2x3xf32> to vector<2x1xf32>
    %240 = vector.broadcast %239 : vector<2x1xf32> to vector<2x12xf32>
    %241 = vector.broadcast %8 : vector<1x12xf32> to vector<2x12xf32>
    %242 = arith.mulf %240, %241 : vector<2x12xf32>
    %243 = vector.extract_strided_slice %237 {offsets = [0, 1], sizes = [2, 1], strides = [1, 1]} : vector<2x3xf32> to vector<2x1xf32>
    %244 = vector.broadcast %243 : vector<2x1xf32> to vector<2x12xf32>
    %245 = vector.broadcast %9 : vector<1x12xf32> to vector<2x12xf32>
    %246 = arith.mulf %244, %245 : vector<2x12xf32>
    %247 = arith.addf %242, %246 : vector<2x12xf32>
    %248 = vector.extract_strided_slice %237 {offsets = [0, 2], sizes = [2, 1], strides = [1, 1]} : vector<2x3xf32> to vector<2x1xf32>
    %249 = vector.broadcast %248 : vector<2x1xf32> to vector<2x12xf32>
    %250 = vector.broadcast %10 : vector<1x12xf32> to vector<2x12xf32>
    %251 = arith.mulf %249, %250 : vector<2x12xf32>
    %252 = arith.addf %247, %251 : vector<2x12xf32>
    %253 = vector.extract_strided_slice %7 {offsets = [14, 0], sizes = [2, 12], strides = [1, 1]} : vector<16x12xf32> to vector<2x12xf32>
    %254 = arith.addf %253, %252 : vector<2x12xf32>
    %255 = arith.negf %254 : vector<2x12xf32>
    %256 = math.exp %255 : vector<2x12xf32>
    %cst_23 = arith.constant 1.000000e+00 : f32
    %257 = vector.broadcast %cst_23 : f32 to vector<2x12xf32>
    %258 = arith.addf %257, %256 : vector<2x12xf32>
    %259 = arith.divf %257, %258 : vector<2x12xf32>
    %260 = vector.extract_strided_slice %259 {offsets = [0, 0], sizes = [2, 3], strides = [1, 1]} : vector<2x12xf32> to vector<2x3xf32>
    %261 = vector.extract_strided_slice %259 {offsets = [0, 3], sizes = [2, 3], strides = [1, 1]} : vector<2x12xf32> to vector<2x3xf32>
    %262 = vector.extract_strided_slice %259 {offsets = [0, 6], sizes = [2, 3], strides = [1, 1]} : vector<2x12xf32> to vector<2x3xf32>
    %263 = vector.extract_strided_slice %254 {offsets = [0, 9], sizes = [2, 3], strides = [1, 1]} : vector<2x12xf32> to vector<2x3xf32>
    %264 = math.tanh %263 : vector<2x3xf32>
    %265 = arith.mulf %261, %235 : vector<2x3xf32>
    %266 = arith.mulf %260, %264 : vector<2x3xf32>
    %267 = arith.addf %265, %266 : vector<2x3xf32>
    %268 = math.tanh %267 : vector<2x3xf32>
    %269 = arith.mulf %262, %268 : vector<2x3xf32>
    %c14 = arith.constant 14 : index
    %c0_24 = arith.constant 0 : index
    %270 = vector.load %arg5[%c14, %c0_24] : memref<16x3xf32, #tpu.memory_space<vmem>>, vector<2x3xf32>
    tpu.vector_store %arg5[%c14, %c0_24], %269 {strides = array<i32>} : memref<16x3xf32, #tpu.memory_space<vmem>>, vector<2x3xf32>,
    %c0_25 = arith.constant 0 : index
    %c0_26 = arith.constant 0 : index
    %271 = vector.load %arg3[%c0_25, %c0_26] : memref<4x1xf32, #tpu.memory_space<vmem>>, vector<3x1xf32>
    %c3 = arith.constant 3 : index
    %c0_27 = arith.constant 0 : index
    %272 = vector.load %arg3[%c3, %c0_27] : memref<4x1xf32, #tpu.memory_space<vmem>>, vector<1x1xf32>
    %c0_28 = arith.constant 0 : index
    %c0_29 = arith.constant 0 : index
    %273 = vector.load %arg5[%c0_28, %c0_29] : memref<16x3xf32, #tpu.memory_space<vmem>>, vector<16x3xf32>
    %cst_30 = arith.constant dense<0.000000e+00> : vector<16x1xf32>
    %274 = tpu.matmul %273, %271, %cst_30 {dimension_numbers = #tpu.dot_dimension_numbers<[1], [0], [0], [1], [0, 0, 1, 1], [], []>} : vector<16x3xf32>, vector<3x1xf32>, vector<16x1xf32> -> vector<16x1xf32>
    %275 = vector.broadcast %272 : vector<1x1xf32> to vector<16x1xf32>
    %276 = arith.addf %274, %275 : vector<16x1xf32>
    %c0_31 = arith.constant 0 : index
    %c0_32 = arith.constant 0 : index
    %277 = vector.load %arg4[%c0_31, %c0_32] : memref<16x1xf32, #tpu.memory_space<vmem>>, vector<16x1xf32>
    tpu.vector_store %arg4[%c0_31, %c0_32], %276 {strides = array<i32>} : memref<16x1xf32, #tpu.memory_space<vmem>>, vector<16x1xf32>,
    return
  }
}

</mosaic_0001>

<bundles_post_ra>
// kernel: lstm_tagger_forward.1
= control target key start
LH: loop header
LB: loop body
LE: loop exit
PB: predicated region body
PF: predicated region fallthrough
CT: control target
= control target key end

     0   :  { %vm33_vm0 = vcmask 1045504   ;;  %vm26_vm1 = vcmask 48128   ;;  %v785_v2 = vmov 0   ;;  %v786_v5 = vmov 2   ;;  %s789_s28 = smov 3   ;;  %s985_s2 = inlined_call_operand.vmem [shape: f32[24,12], index: 2, kind: input, shape index: {}]   ;;  %s986_s0 = inlined_call_operand.vmem [shape: f32[16,6], index: 0, kind: input, shape index: {}]   ;;  %s987_s1 = inlined_call_operand.vmem [shape: f32[2,2,3], index: 1, kind: input, shape index: {}]   ;;  %s988_s3 = inlined_call_operand.vmem [shape: f32[4,1], index: 3, kind: input, shape index: {}]   ;;  %s989_s4 = inlined_call_operand.vmem [shape: f32[16,1], index: 4, kind: output, shape index: {}]  }
   0x1   :  { %v17_v0 = vld [vmem:[%s985_s2] sm:$0xff]  ;;  %696 = vset.pattern.permute.xlu0 %v785_v2  ;;  %v21_v3 = vld [vmem:[%s986_s0 + $0x8] sm:$0xff]  ;;  %698 = vset.pattern.permute.xlu1 %v786_v5  ;;  %v787_v6 = vmov 1   ;;  %v22_v7 = vlaneseq  ;;  %v19_v17 = vld [vmem:[%s985_s2 + $0x10] sm:$0xff]  ;;  %v790_v43 = vmov 7   ;;  %v791_v44 = vmov 6  }
   0x2   :  { %v20_v1 = vld [vmem:[%s986_s0] sm:$0xff]  ;;  %677 = vmatprep.subr.msk.mxu0 %vm33_vm0, %v17_v0  ;;  %v18_v12 = vld [vmem:[%s985_s2 + $0x8] sm:$0xff]  ;;  %s788_s2 = smov 119   ;;  %v792_v48 = vmov 8   ;;  %vm178_vm2 = vcmask 17408   ;;  %vm286_vm3 = vcmask 21508  }
   0x3   :  { %679 = vmatprep.mubr.msk.f32.mxu0 %vm26_vm1, %v20_v1  ;;  %v112_v4 = vld [vmem:[%s987_s1] sm:$0x3]  ;;  %678 = vmatpush3.msk.msra.mxu0 %vm33_vm0, %v17_v0  ;;  %v23_v8 = vshrl.u32 %v22_v7, 7  ;;  %v658_v32 = vld [vmem:[%s987_s1 + $0x2] sm:$0x3]  ;;  %s793_s1 = smov 122  }
   0x4   :  { %117 = vperm.xlu0 %696, %v112_v4   ;;  %680 = vmatmul.mubr.msk.f32.vlgmr.msra.gmra.mxu0 %vm26_vm1, %v21_v3  ;;  %vm569_vm4 = vcmask 1042432   ;;  %vm232_vm5 = vcmask 19458   ;;  %vm340_vm6 = vcmask 23558   ;;  %vm562_vm7 = vcmask 23552  }
   0x5   :  { %136 = vperm.xlu1 %698, %v112_v4   ;;  %v24_v10 = vsub.s32 0, %v23_v8  ;;  %v131_v11 = vsub.s32 1, %v23_v8  ;;  %v141_v15 = vsub.s32 2, %v23_v8  ;;  %vm648_vm8 = vcmask 7168  }
   0x7   :  { %v834_v13 = vrot.slane %v18_v12, %v24_v10  ;;  %v836_v14 = vrot.slane %v18_v12, %v131_v11  ;;  %v841_v18 = vrot.slane %v18_v12, %v141_v15  ;;  %v25_v22 = vrot.slane %v19_v17, %v24_v10 }
   0x8   :  { %697 = vset.pattern.permute.xlu0 %v787_v6 }
   0x9   :  { %126 = vperm.xlu0 %697, %v112_v4   ;;  %700 = vset.pattern.permute.xlu1 %v790_v43 }
   0xd   :  { %699 = vset.pattern.permute.xlu0 %v791_v44 }
  0x7f   :  { %v118_v9 = vpop.permute.xlu0 %117 }
  0x80   :  { %v124_v19 = vmul.f32 %v834_v13, %v118_v9  ;;  %v137_v21 = vpop.permute.xlu1 %136 }
  0x81   :  { %v143_v24 = vmul.f32 %v841_v18, %v137_v21 }
  0x84   :  { %v127_v16 = vpop.permute.xlu0 %126 }
  0x85   :  { %v133_v20 = vmul.f32 %v836_v14, %v127_v16 }
  0x87   :  { %v134_v23 = vadd.f32 %v133_v20, %v124_v19 }
  0x89   :  { %v144_v28 = vadd.f32 %v143_v24, %v134_v23 }
  0xc4   :  { %v681_v25 = vpop.f32.mrf.mxu0 }
  0xc5   :  { %v846_v26 = vadd.f32 %v681_v25, %v25_v22 }
  0xc6   :  { %v103_v27 = vpop.f32.mrf.mxu0 }
  0xc7   :  { %v848_v29 = vadd.f32 %v103_v27, %v25_v22 }
  0xc9   :  { %v145_v30 = vadd.f32 %v144_v28, %v848_v29 }
  0xcb   :  { %721 = vtanh.f32 %v145_v30  ;;  %v659_v33 = vmul.f32 -1.442695, %v145_v30 }
  0xcd   :  { %723 = vpow2.f32 %v659_v33 }
  0xd8   :  { %v722_v31 = vpop.eup %721 }
  0xd9   :  { %159 = vrot.lane.b32.xlu1 %v722_v31, %s788_s2 }
  0xda   :  { %v724_v34 = vpop.eup %723 }
  0xdb   :  { %v149_v35 = vadd.f32 1.0, %v724_v34 }
  0xdd   :  { %154 = vrot.lane.b32.xlu1 %v658_v32, %s789_s28  ;;  %725 = vrcp.f32 %v149_v35 }
  0xea   :  { %v726_v36 = vpop.eup %725 }
 0x14b   :  { %v160_v37 = vpop.permute.xlu1 %159 }
 0x14c   :  { %v162_v38 = vmul.f32 %v726_v36, %v160_v37 }
 0x14e   :  { %164 = vrot.lane.b32.xlu0 %v162_v38, %s789_s28 }
 0x14f   :  { %v155_v39 = vpop.permute.xlu1 %154 }
 0x150   :  { %v157_v40 = vmul.f32 %v726_v36, %v155_v39 }
 0x1c0   :  { %v165_v41 = vpop.permute.xlu0 %164 }
 0x1c1   :  { %v167_v42 = vadd.f32 %v165_v41, %v157_v40 }
 0x1c3   :  { %727 = vtanh.f32 %v167_v42  ;;  %v209_v2 = vrot.slane %v167_v42, 6 }
 0x1d0   :  { %v728_v45 = vpop.eup %727 }
 0x1d1   :  { %170 = vrot.lane.b32.xlu1 %v728_v45, %s789_s28 }
 0x243   :  { %v171_v46 = vpop.permute.xlu1 %170 }
 0x244   :  { %v860_v47 = vmul.f32 %v726_v36, %v171_v46 }
 0x246   :  { %186 = vperm.xlu1 %700, %v860_v47   ;;  %181 = vperm.xlu0 %699, %v860_v47  }
 0x24a   :  { %701 = vset.pattern.permute.xlu1 %v792_v48  ;;  %703 = vset.pattern.permute.xlu0 %v790_v43 }
 0x24b   :  { %192 = vperm.xlu1 %701, %v860_v47  }
 0x24f   :  { %702 = vset.pattern.permute.xlu1 %v791_v44 }
 0x2c1   :  { %v187_v49 = vpop.permute.xlu1 %186  ;;  %v182_v50 = vpop.permute.xlu0 %181 }
 0x2c2   :  { %v189_v51 = vmul.f32 %v187_v49, %v836_v14  ;;  %v184_v52 = vmul.f32 %v182_v50, %v834_v13 }
 0x2c4   :  { %v190_v54 = vadd.f32 %v189_v51, %v184_v52 }
 0x2c6   :  { %v193_v53 = vpop.permute.xlu1 %192 }
 0x2c7   :  { %v195_v55 = vmul.f32 %v193_v53, %v841_v18 }
 0x2c9   :  { %v196_v56 = vadd.f32 %v195_v55, %v190_v54 }
 0x2cb   :  { %v198_v57 = vrot.slane %v196_v56, 6 }
 0x2cd   :  { %v200_v58 = vadd.f32 %v198_v57, %v848_v29 }
 0x2cf   :  { %729 = vtanh.f32 %v200_v58  ;;  %v660_v60 = vmul.f32 -1.442695, %v200_v58 }
 0x2d1   :  { %731 = vpow2.f32 %v660_v60 }
 0x2dc   :  { %v730_v59 = vpop.eup %729 }
 0x2dd   :  { %213 = vrot.lane.b32.xlu0 %v730_v59, %s788_s2 }
 0x2de   :  { %v732_v61 = vpop.eup %731 }
 0x2df   :  { %v204_v62 = vadd.f32 1.0, %v732_v61 }
 0x2e1   :  { %733 = vrcp.f32 %v204_v62 }
 0x2ee   :  { %v734_v63 = vpop.eup %733 }
 0x2ef   :  { %v211_v3 = vmul.f32 %v734_v63, %v209_v2 }
 0x34f   :  { %v214_v0 = vpop.permute.xlu0 %213 }
 0x350   :  { %v216_v1 = vmul.f32 %v734_v63, %v214_v0 }
 0x352   :  { %218 = vrot.lane.b32.xlu1 %v216_v1, %s789_s28 }
 0x3c4   :  { %v219_v4 = vpop.permute.xlu1 %218 }
 0x3c5   :  { %v221_v5 = vadd.f32 %v219_v4, %v211_v3 }
 0x3c7   :  { %735 = vtanh.f32 %v221_v5  ;;  %v263_v31 = vrot.slane %v221_v5, 6 }
 0x3d4   :  { %v736_v6 = vpop.eup %735 }
 0x3d5   :  { %224 = vrot.lane.b32.xlu0 %v736_v6, %s789_s28 }
 0x447   :  { %v225_v7 = vpop.permute.xlu0 %224 }
 0x448   :  { %v875_v8 = vmul.f32 %v734_v63, %v225_v7 }
 0x44a   :  { %240 = vperm.xlu0 %703, %v875_v8   ;;  %235 = vperm.xlu1 %702, %v875_v8  }
 0x44e   :  { %704 = vset.pattern.permute.xlu1 %v792_v48  ;;  %705 = vset.pattern.permute.xlu0 %v791_v44 }
 0x44f   :  { %246 = vperm.xlu1 %704, %v875_v8  }
 0x453   :  { %706 = vset.pattern.permute.xlu1 %v790_v43 }
 0x4c5   :  { %v241_v9 = vpop.permute.xlu0 %240  ;;  %v236_v10 = vpop.permute.xlu1 %235 }
 0x4c6   :  { %v243_v11 = vmul.f32 %v241_v9, %v836_v14  ;;  %v238_v12 = vmul.f32 %v236_v10, %v834_v13 }
 0x4c8   :  { %v244_v16 = vadd.f32 %v243_v11, %v238_v12 }
 0x4ca   :  { %v247_v15 = vpop.permute.xlu1 %246 }
 0x4cb   :  { %v249_v17 = vmul.f32 %v247_v15, %v841_v18 }
 0x4cd   :  { %v250_v19 = vadd.f32 %v249_v17, %v244_v16 }
 0x4cf   :  { %v252_v20 = vrot.slane %v250_v19, 6 }
 0x4d1   :  { %v254_v21 = vadd.f32 %v252_v20, %v848_v29 }
 0x4d3   :  { %737 = vtanh.f32 %v254_v21  ;;  %v661_v23 = vmul.f32 -1.442695, %v254_v21 }
 0x4d5   :  { %739 = vpow2.f32 %v661_v23 }
 0x4e0   :  { %v738_v22 = vpop.eup %737 }
 0x4e1   :  { %267 = vrot.lane.b32.xlu1 %v738_v22, %s788_s2 }
 0x4e2   :  { %v740_v24 = vpop.eup %739 }
 0x4e3   :  { %v258_v25 = vadd.f32 1.0, %v740_v24 }
 0x4e5   :  { %741 = vrcp.f32 %v258_v25 }
 0x4f2   :  { %v742_v27 = vpop.eup %741 }
 0x4f3   :  { %v265_v32 = vmul.f32 %v742_v27, %v263_v31 }
 0x553   :  { %v268_v28 = vpop.permute.xlu1 %267 }
 0x554   :  { %v270_v30 = vmul.f32 %v742_v27, %v268_v28 }
 0x556   :  { %272 = vrot.lane.b32.xlu0 %v270_v30, %s789_s28 }
 0x5c8   :  { %v273_v33 = vpop.permute.xlu0 %272 }
 0x5c9   :  { %v275_v34 = vadd.f32 %v273_v33, %v265_v32 }
 0x5cb   :  { %743 = vtanh.f32 %v275_v34  ;;  %v317_v59 = vrot.slane %v275_v34, 6 }
 0x5d8   :  { %v744_v35 = vpop.eup %743 }
 0x5d9   :  { %278 = vrot.lane.b32.xlu1 %v744_v35, %s789_s28 }
 0x64b   :  { %v279_v36 = vpop.permute.xlu1 %278 }
 0x64c   :  { %v890_v37 = vmul.f32 %v742_v27, %v279_v36 }
 0x64e   :  { %294 = vperm.xlu1 %706, %v890_v37   ;;  %289 = vperm.xlu0 %705, %v890_v37  }
 0x652   :  { %707 = vset.pattern.permute.xlu1 %v792_v48  ;;  %709 = vset.pattern.permute.xlu0 %v790_v43 }
 0x653   :  { %300 = vperm.xlu1 %707, %v890_v37  }
 0x657   :  { %708 = vset.pattern.permute.xlu1 %v791_v44 }
 0x6c9   :  { %v295_v38 = vpop.permute.xlu1 %294  ;;  %v290_v39 = vpop.permute.xlu0 %289 }
 0x6ca   :  { %v297_v40 = vmul.f32 %v295_v38, %v836_v14  ;;  %v292_v41 = vmul.f32 %v290_v39, %v834_v13 }
 0x6cc   :  { %v298_v45 = vadd.f32 %v297_v40, %v292_v41 }
 0x6ce   :  { %v301_v42 = vpop.permute.xlu1 %300 }
 0x6cf   :  { %v303_v46 = vmul.f32 %v301_v42, %v841_v18 }
 0x6d1   :  { %v304_v49 = vadd.f32 %v303_v46, %v298_v45 }
 0x6d3   :  { %v306_v50 = vrot.slane %v304_v49, 6 }
 0x6d5   :  { %v308_v51 = vadd.f32 %v306_v50, %v848_v29 }
 0x6d7   :  { %745 = vtanh.f32 %v308_v51  ;;  %v662_v53 = vmul.f32 -1.442695, %v308_v51 }
 0x6d9   :  { %747 = vpow2.f32 %v662_v53 }
 0x6e4   :  { %v746_v52 = vpop.eup %745 }
 0x6e5   :  { %321 = vrot.lane.b32.xlu0 %v746_v52, %s788_s2 }
 0x6e6   :  { %v748_v54 = vpop.eup %747 }
 0x6e7   :  { %v312_v55 = vadd.f32 1.0, %v748_v54 }
 0x6e9   :  { %749 = vrcp.f32 %v312_v55 }
 0x6f6   :  { %v750_v56 = vpop.eup %749 }
 0x6f7   :  { %v319_v60 = vmul.f32 %v750_v56, %v317_v59 }
 0x757   :  { %v322_v57 = vpop.permute.xlu0 %321 }
 0x758   :  { %v324_v58 = vmul.f32 %v750_v56, %v322_v57 }
 0x75a   :  { %326 = vrot.lane.b32.xlu1 %v324_v58, %s789_s28 }
 0x7cc   :  { %v327_v61 = vpop.permute.xlu1 %326 }
 0x7cd   :  { %v329_v62 = vadd.f32 %v327_v61, %v319_v60 }
 0x7cf   :  { %751 = vtanh.f32 %v329_v62  ;;  %v371_v22 = vrot.slane %v329_v62, 6 }
 0x7dc   :  { %v752_v29 = vpop.eup %751 }
 0x7dd   :  { %332 = vrot.lane.b32.xlu0 %v752_v29, %s789_s28 }
 0x84f   :  { %v333_v63 = vpop.permute.xlu0 %332 }
 0x850   :  { %v905_v0 = vmul.f32 %v750_v56, %v333_v63 }
 0x852   :  { %348 = vperm.xlu0 %709, %v905_v0   ;;  %343 = vperm.xlu1 %708, %v905_v0  }
 0x856   :  { %710 = vset.pattern.permute.xlu1 %v792_v48  ;;  %711 = vset.pattern.permute.xlu0 %v791_v44 }
 0x857   :  { %354 = vperm.xlu1 %710, %v905_v0  }
 0x85b   :  { %712 = vset.pattern.permute.xlu1 %v790_v43 }
 0x8cd   :  { %v349_v1 = vpop.permute.xlu0 %348  ;;  %v344_v2 = vpop.permute.xlu1 %343 }
 0x8ce   :  { %v351_v3 = vmul.f32 %v349_v1, %v836_v14  ;;  %v346_v4 = vmul.f32 %v344_v2, %v834_v13 }
 0x8d0   :  { %v352_v6 = vadd.f32 %v351_v3, %v346_v4 }
 0x8d2   :  { %v355_v5 = vpop.permute.xlu1 %354 }
 0x8d3   :  { %v357_v7 = vmul.f32 %v355_v5, %v841_v18 }
 0x8d5   :  { %v358_v9 = vadd.f32 %v357_v7, %v352_v6 }
 0x8d7   :  { %v360_v10 = vrot.slane %v358_v9, 6 }
 0x8d9   :  { %v362_v11 = vadd.f32 %v360_v10, %v846_v26 }
 0x8db   :  { %753 = vtanh.f32 %v362_v11  ;;  %v663_v15 = vmul.f32 -1.442695, %v362_v11 }
 0x8dd   :  { %755 = vpow2.f32 %v663_v15 }
 0x8e8   :  { %v754_v12 = vpop.eup %753 }
 0x8e9   :  { %375 = vrot.lane.b32.xlu1 %v754_v12, %s788_s2 }
 0x8ea   :  { %v756_v16 = vpop.eup %755 }
 0x8eb   :  { %v366_v17 = vadd.f32 1.0, %v756_v16 }
 0x8ed   :  { %757 = vrcp.f32 %v366_v17 }
 0x8fa   :  { %v758_v19 = vpop.eup %757 }
 0x8fb   :  { %v373_v23 = vmul.f32 %v758_v19, %v371_v22 }
 0x95b   :  { %v376_v20 = vpop.permute.xlu1 %375 }
 0x95c   :  { %v378_v21 = vmul.f32 %v758_v19, %v376_v20 }
 0x95e   :  { %380 = vrot.lane.b32.xlu0 %v378_v21, %s789_s28 }
 0x9d0   :  { %v381_v24 = vpop.permute.xlu0 %380 }
 0x9d1   :  { %v383_v25 = vadd.f32 %v381_v24, %v373_v23 }
 0x9d3   :  { %759 = vtanh.f32 %v383_v25  ;;  %v424_v53 = vrot.slane %v383_v25, 6 }
 0x9e0   :  { %v760_v27 = vpop.eup %759 }
 0x9e1   :  { %386 = vrot.lane.b32.xlu1 %v760_v27, %s789_s28 }
 0xa53   :  { %v387_v28 = vpop.permute.xlu1 %386 }
 0xa54   :  { %v920_v30 = vmul.f32 %v758_v19, %v387_v28 }
 0xa56   :  { %401 = vperm.xlu1 %712, %v920_v30   ;;  %396 = vperm.xlu0 %711, %v920_v30  }
 0xa5a   :  { %713 = vset.pattern.permute.xlu1 %v792_v48  ;;  %715 = vset.pattern.permute.xlu0 %v790_v43 }
 0xa5b   :  { %407 = vperm.xlu1 %713, %v920_v30  }
 0xa5f   :  { %714 = vset.pattern.permute.xlu1 %v791_v44 }
 0xad1   :  { %v402_v31 = vpop.permute.xlu1 %401  ;;  %v397_v32 = vpop.permute.xlu0 %396 }
 0xad2   :  { %v404_v33 = vmul.f32 %v402_v31, %v836_v14  ;;  %v399_v34 = vmul.f32 %v397_v32, %v834_v13 }
 0xad4   :  { %v405_v36 = vadd.f32 %v404_v33, %v399_v34 }
 0xad6   :  { %v408_v35 = vpop.permute.xlu1 %407 }
 0xad7   :  { %v410_v38 = vmul.f32 %v408_v35, %v841_v18 }
 0xad9   :  { %v411_v39 = vadd.f32 %v410_v38, %v405_v36 }
 0xadb   :  { %v413_v40 = vrot.slane %v411_v39, 6 }
 0xadd   :  { %v415_v41 = vadd.f32 %v413_v40, %v846_v26 }
 0xadf   :  { %761 = vtanh.f32 %v415_v41  ;;  %v664_v45 = vmul.f32 -1.442695, %v415_v41 }
 0xae1   :  { %763 = vpow2.f32 %v664_v45 }
 0xaec   :  { %v762_v42 = vpop.eup %761 }
 0xaed   :  { %428 = vrot.lane.b32.xlu0 %v762_v42, %s788_s2 }
 0xaee   :  { %v764_v46 = vpop.eup %763 }
 0xaef   :  { %v419_v49 = vadd.f32 1.0, %v764_v46 }
 0xaf1   :  { %765 = vrcp.f32 %v419_v49 }
 0xafe   :  { %v766_v50 = vpop.eup %765 }
 0xaff   :  { %v426_v54 = vmul.f32 %v766_v50, %v424_v53 }
 0xb5f   :  { %v429_v51 = vpop.permute.xlu0 %428 }
 0xb60   :  { %v431_v52 = vmul.f32 %v766_v50, %v429_v51 }
 0xb62   :  { %433 = vrot.lane.b32.xlu1 %v431_v52, %s789_s28 }
 0xbd4   :  { %v434_v55 = vpop.permute.xlu1 %433 }
 0xbd5   :  { %v436_v56 = vadd.f32 %v434_v55, %v426_v54  ;;  %v667_v55 = vld [vmem:[%s988_s3 + $0x3] ss:$0 sm:$0xff] }
 0xbd7   :  { %767 = vtanh.f32 %v436_v56  ;;  %v477_v12 = vrot.slane %v436_v56, 6 }
 0xbe4   :  { %v768_v57 = vpop.eup %767 }
 0xbe5   :  { %439 = vrot.lane.b32.xlu0 %v768_v57, %s789_s28 }
 0xc57   :  { %v440_v58 = vpop.permute.xlu0 %439 }
 0xc58   :  { %v935_v59 = vmul.f32 %v766_v50, %v440_v58 }
 0xc5a   :  { %454 = vperm.xlu0 %715, %v935_v59   ;;  %449 = vperm.xlu1 %714, %v935_v59  }
 0xc5e   :  { %716 = vset.pattern.permute.xlu1 %v792_v48  ;;  %717 = vset.pattern.permute.xlu0 %v791_v44 }
 0xc5f   :  { %460 = vperm.xlu1 %716, %v935_v59  }
 0xc63   :  { %718 = vset.pattern.permute.xlu1 %v790_v43 }
 0xcd5   :  { %v455_v60 = vpop.permute.xlu0 %454  ;;  %v450_v61 = vpop.permute.xlu1 %449 }
 0xcd6   :  { %v457_v62 = vmul.f32 %v455_v60, %v836_v14  ;;  %v452_v29 = vmul.f32 %v450_v61, %v834_v13 }
 0xcd8   :  { %v458_v1 = vadd.f32 %v457_v62, %v452_v29 }
 0xcda   :  { %v461_v63 = vpop.permute.xlu1 %460 }
 0xcdb   :  { %v463_v2 = vmul.f32 %v461_v63, %v841_v18 }
 0xcdd   :  { %v464_v3 = vadd.f32 %v463_v2, %v458_v1 }
 0xcdf   :  { %v466_v4 = vrot.slane %v464_v3, 6 }
 0xce1   :  { %v468_v5 = vadd.f32 %v466_v4, %v846_v26 }
 0xce3   :  { %769 = vtanh.f32 %v468_v5  ;;  %v665_v6 = vmul.f32 -1.442695, %v468_v5 }
 0xce5   :  { %771 = vpow2.f32 %v665_v6 }
 0xcf0   :  { %v770_v44 = vpop.eup %769 }
 0xcf1   :  { %481 = vrot.lane.b32.xlu1 %v770_v44, %s788_s2 }
 0xcf2   :  { %v772_v43 = vpop.eup %771 }
 0xcf3   :  { %v472_v7 = vadd.f32 1.0, %v772_v43 }
 0xcf5   :  { %773 = vrcp.f32 %v472_v7 }
 0xd02   :  { %v774_v9 = vpop.eup %773 }
 0xd03   :  { %v479_v15 = vmul.f32 %v774_v9, %v477_v12 }
 0xd63   :  { %v482_v10 = vpop.permute.xlu1 %481 }
 0xd64   :  { %v484_v11 = vmul.f32 %v774_v9, %v482_v10 }
 0xd66   :  { %486 = vrot.lane.b32.xlu0 %v484_v11, %s789_s28 }
 0xdd8   :  { %v487_v16 = vpop.permute.xlu0 %486 }
 0xdd9   :  { %v489_v17 = vadd.f32 %v487_v16, %v479_v15 }
 0xddb   :  { %775 = vtanh.f32 %v489_v17 }
 0xde8   :  { %v776_v19 = vpop.eup %775 }
 0xde9   :  { %492 = vrot.lane.b32.xlu1 %v776_v19, %s789_s28 }
 0xe5b   :  { %v493_v20 = vpop.permute.xlu1 %492 }
 0xe5c   :  { %v495_v21 = vmul.f32 %v774_v9, %v493_v20 }
 0xe5e   :  { %507 = vperm.xlu1 %718, %v495_v21   ;;  %502 = vperm.xlu0 %717, %v495_v21  }
 0xe62   :  { %719 = vset.pattern.permute.xlu1 %v792_v48  ;;  %720 = vset.pattern.permute.xlu0 %v792_v48 }
 0xe63   :  { %513 = vperm.xlu1 %719, %v495_v21  }
 0xed9   :  { %v508_v22 = vpop.permute.xlu1 %507  ;;  %v503_v23 = vpop.permute.xlu0 %502 }
 0xeda   :  { %v510_v24 = vmul.f32 %v508_v22, %v836_v14  ;;  %v505_v25 = vmul.f32 %v503_v23, %v834_v13 }
 0xedc   :  { %v511_v28 = vadd.f32 %v510_v24, %v505_v25 }
 0xede   :  { %v514_v27 = vpop.permute.xlu1 %513 }
 0xedf   :  { %v516_v31 = vmul.f32 %v514_v27, %v841_v18  ;;  %v530_v18 = vrot.slane %v489_v17, 6 }
 0xee1   :  { %v517_v32 = vadd.f32 %v516_v31, %v511_v28 }
 0xee3   :  { %v519_v33 = vrot.slane %v517_v32, 6 }
 0xee5   :  { %v521_v34 = vadd.f32 %v519_v33, %v846_v26 }
 0xee7   :  { %777 = vtanh.f32 %v521_v34  ;;  %v666_v48 = vmul.f32 -1.442695, %v521_v34 }
 0xee9   :  { %779 = vpow2.f32 %v666_v48 }
 0xef4   :  { %v778_v35 = vpop.eup %777 }
 0xef5   :  { %534 = vrot.lane.b32.xlu0 %v778_v35, %s788_s2 }
 0xef6   :  { %v780_v36 = vpop.eup %779 }
 0xef7   :  { %v525_v38 = vadd.f32 1.0, %v780_v36 }
 0xef9   :  { %781 = vrcp.f32 %v525_v38 }
 0xf06   :  { %v782_v14 = vpop.eup %781 }
 0xf07   :  { %v532_v26 = vmul.f32 %v782_v14, %v530_v18 }
 0xf67   :  { %v535_v39 = vpop.permute.xlu0 %534 }
 0xf68   :  { %v537_v13 = vmul.f32 %v782_v14, %v535_v39 }
 0xf6a   :  { %539 = vrot.lane.b32.xlu1 %v537_v13, %s789_s28 }
 0xf6e   :  { %175 = vrot.lane.b32.xlu1 %v860_v47, %s793_s1 }
 0xf72   :  { %283 = vrot.lane.b32.xlu1 %v890_v37, %s793_s1 }
 0xf76   :  { %391 = vrot.lane.b32.xlu1 %v920_v30, %s793_s1  ;;  %v554_v30 = vld [vmem:[%s988_s3] sm:$0x7] }
 0xf77   :  { %682 = vmatprep.subr.msk.mxu1 %vm569_vm4, %v554_v30 }
 0xf78   :  { %683 = vmatpush3.msk.msra.mxu1 %vm569_vm4, %v554_v30 }
 0xf7a   :  { %497 = vrot.lane.b32.xlu1 %v495_v21, %s793_s1 }
 0xfdc   :  { %v540_v40 = vpop.permute.xlu1 %539 }
 0xfdd   :  { %v542_v41 = vadd.f32 %v540_v40, %v532_v26 }
 0xfdf   :  { %783 = vtanh.f32 %v542_v41 }
 0xfe0   :  { %v176_v42 = vpop.permute.xlu1 %175 }
 0xfe1   :  { %179 = vst.msk [vmem:[#allocation2] sm:$0x3] %vm178_vm2, %v176_v42 }
 0xfe4   :  { %v284_v45 = vpop.permute.xlu1 %283 }
 0xfe5   :  { %287 = vst.msk [vmem:[#allocation2] sm:$0x30] %vm286_vm3, %v284_v45 }
 0xfe8   :  { %v392_v47 = vpop.permute.xlu1 %391 }
 0xfe9   :  { %394 = vst.msk [vmem:[#allocation2 + $0x8] sm:$0x3] %vm178_vm2, %v392_v47 }
 0xfec   :  { %v784_v46 = vpop.eup %783  ;;  %v498_v37 = vpop.permute.xlu1 %497 }
 0xfed   :  { %500 = vst.msk [vmem:[#allocation2 + $0x8] sm:$0x30] %vm286_vm3, %v498_v37  ;;  %545 = vrot.lane.b32.xlu0 %v784_v46, %s789_s28 }
 0xff1   :  { %229 = vrot.lane.b32.xlu0 %v875_v8, %s793_s1 }
 0xff5   :  { %337 = vrot.lane.b32.xlu0 %v905_v0, %s793_s1 }
 0xff9   :  { %444 = vrot.lane.b32.xlu0 %v935_v59, %s793_s1 }
0x105f   :  { %v546_v49 = vpop.permute.xlu0 %545 }
0x1060   :  { %v548_v50 = vmul.f32 %v782_v14, %v546_v49 }
0x1062   :  { %550 = vrot.lane.b32.xlu0 %v548_v50, %s793_s1 }
0x1063   :  { %v230_v51 = vpop.permute.xlu0 %229 }
0x1064   :  { %233 = vst.msk [vmem:[#allocation2] sm:$0xc] %vm232_vm5, %v230_v51 }
0x1067   :  { %v338_v8 = vpop.permute.xlu0 %337 }
0x1068   :  { %341 = vst.msk [vmem:[#allocation2] sm:$0xc0] %vm340_vm6, %v338_v8 }
0x106b   :  { %v445_v0 = vpop.permute.xlu0 %444 }
0x106c   :  { %447 = vst.msk [vmem:[#allocation2 + $0x8] sm:$0xc] %vm232_vm5, %v445_v0 }
0x106f   :  { %v556_v52 = vld [vmem:[#allocation2] sm:$0xff] }
0x1070   :  { %684 = vmatprep.mubr.msk.f32.mxu1 %vm562_vm7, %v556_v52 }
0x10d4   :  { %v551_v53 = vpop.permute.xlu0 %550 }
0x10d5   :  { %553 = vst.msk [vmem:[#allocation2 + $0x8] sm:$0xc0] %vm340_vm6, %v551_v53 }
0x10dc   :  { %v557_v54 = vld [vmem:[#allocation2 + $0x8] sm:$0xff] }
0x10dd   :  { %685 = vmatmul.mubr.msk.f32.vlgmr.msra.gmra.mxu1 %vm562_vm7, %v557_v54 }
0x119d   :  { %v686_v56 = vpop.f32.mrf.mxu1 }
0x119e   :  { %v645_v57 = vadd.f32 %v686_v56, %v667_v55 }
0x119f   :  { %v639_v58 = vpop.f32.mrf.mxu1 }
0x11a0   :  { %650 = vst.msk [vmem:[%s989_s4 + $0x8] sm:$0xff] %vm648_vm8, %v645_v57  ;;  %v640_v59 = vadd.f32 %v667_v55, %v639_v58 }
0x11a2   :  { %649 = vst.msk [vmem:[%s989_s4] sm:$0xff] %vm648_vm8, %v640_v59 }

</bundles_post_ra>
